<compile_context>
chip_gen: v7x
topology: tpu7x:2x2x1
jax: 0.10.0
libtpu: 0.0.40
codegen_flags: <defaults>
</compile_context>

<pallas_src>
import math

import jax
import jax.numpy as jnp
import numpy as np
from jax.experimental import pallas as pl
from jax.experimental.pallas import tpu as pltpu

POSITION_EMBEDDINGS = [
    '000', '001', '010', '011', '100', '101', '110', '111',
    '00', '01', '10', '11', '0', '1', '0', '1',
    '00', '01', '10', '11', '00', '01', '10', '11', '0', '1',
]
OUTPUT_ORDER = [13, 12, 15, 14, 17, 16, 19, 18, 21, 20, 23, 22, 25, 24,
                1, 0, 3, 2, 5, 4, 7, 6, 9, 8, 11, 10]
NUM_BRANCHES = 7
BASE_INPUT_SIZES = [3, 2, 1, 1, 2, 2, 1]

LANES = 128             # lane-dense packed channel width (all depths fit)
ROWS = 32               # 26 position embeddings padded to a sublane multiple
ONES_LANE = LANES - 1   # constant-1 lane carrying the folded biases


def branch_index(i):
    if i < 8:
        return 0
    elif i < 12:
        return 1
    elif i < 14:
        return 2
    elif i < 16:
        return 3
    elif i < 20:
        return 4
    elif i < 24:
        return 5
    return 6


# ----------------------------------------------------------------------------
# Parameter construction (matches the torch module's shapes / layer structure)
# ----------------------------------------------------------------------------
def init_branch_params(key, SoW_len, output_sizes):
    input_sizes = [s + SoW_len for s in BASE_INPUT_SIZES]
    branches = []
    for i in range(NUM_BRANCHES):
        in_sz = input_sizes[i]
        out_sz = output_sizes[i]
        if in_sz >= out_sz:
            num_layers = 1
        else:
            num_layers = math.ceil(math.log(out_sz / in_sz, 2))
        layers = []
        c = in_sz
        for _ in range(num_layers):
            key, k1, k2 = jax.random.split(key, 3)
            # ConvTranspose1d(c, 2c, 1, stride=1) == matmul with (c, 2c) matrix
            w = jax.random.normal(k1, (c, 2 * c), jnp.float32) * 0.3
            b = jax.random.normal(k2, (2 * c,), jnp.float32) * 0.1
            layers.append((np.asarray(w), np.asarray(b)))
            c = 2 * c
        key, k1, k2 = jax.random.split(key, 3)
        # Linear(in_sz * 2**L, out_sz), stored as (in, out)
        w = jax.random.normal(k1, (c, out_sz), jnp.float32) * 0.3
        b = jax.random.normal(k2, (out_sz,), jnp.float32) * 0.1
        layers.append((np.asarray(w), np.asarray(b)))
        branches.append(dict(layers=layers, num_layers=num_layers,
                             in_size=in_sz, out_size=out_sz))
    return branches


# ----------------------------------------------------------------------------
# Block-diagonal packing of all 7 branches into 4 lane-dense matmuls,
# with biases folded into row ONES_LANE of each matrix.
# ----------------------------------------------------------------------------
def pack_params(branches):
    L = max(br['num_layers'] for br in branches)     # deepest branch

    widths = [[br['in_size'] * (2 ** min(d, br['num_layers']))
               for br in branches] for d in range(L + 1)]
    offsets = []
    for d in range(L + 1):
        assert sum(widths[d]) <= ONES_LANE, "packed channels collide with ones-lane"
        offsets.append(np.cumsum([0] + widths[d][:-1]).tolist())

    out_widths = [br['out_size'] for br in branches]
    out_offsets = np.cumsum([0] + out_widths[:-1]).tolist()
    assert sum(out_widths) <= ONES_LANE, "packed outputs collide with ones-lane"

    num_mats = L + 1                                  # L deconv layers + linear
    W = np.zeros((num_mats, LANES, LANES), np.float32)

    for bi, br in enumerate(branches):
        nl = br['num_layers']
        # deconv layers (real, then identity padding for shallower branches)
        for d in range(L):
            i0 = offsets[d][bi]
            o0 = offsets[d + 1][bi]
            ci = widths[d][bi]
            co = widths[d + 1][bi]
            if d < nl:
                w, bias = br['layers'][d]
                W[d, i0:i0 + ci, o0:o0 + co] = w
                W[d, ONES_LANE, o0:o0 + co] = bias     # folded bias
            else:
                # identity pass-through; input already >=0 so ReLU is a no-op
                W[d, i0:i0 + ci, o0:o0 + ci] = np.eye(ci, dtype=np.float32)
        # final Linear
        w, bias = br['layers'][nl]
        i0 = offsets[L][bi]
        ci = widths[L][bi]
        o0 = out_offsets[bi]
        co = out_widths[bi]
        W[L, i0:i0 + ci, o0:o0 + co] = w
        W[L, ONES_LANE, o0:o0 + co] = bias             # folded bias

    # Propagate the constant-1 lane through every ReLU layer.
    for d in range(L):
        W[d, ONES_LANE, ONES_LANE] = 1.0

    return dict(W=jnp.asarray(W), num_mats=num_mats,
                in_offsets=offsets[0], in_widths=widths[0],
                out_offsets=out_offsets, out_widths=out_widths)


def build_base_and_mask(packed):
    """Precomputed once: base slab (embedding bits + ones-lane) and the SoW
    lane mask.  Per call, the kernel forms x = base + SoW * mask."""
    base = np.zeros((ROWS, LANES), np.float32)
    mask = np.zeros((ROWS, LANES), np.float32)
    base[:, ONES_LANE] = 1.0
    for r, pe in enumerate(POSITION_EMBEDDINGS):
        b = branch_index(r)
        o = packed['in_offsets'][b]
        bits = [float(ch) for ch in pe]
        base[r, o:o + len(bits)] = bits
        mask[r, o + len(bits)] = 1.0                   # SoW lane (SoW_len == 1)
    return jnp.asarray(base), jnp.asarray(mask)


# ----------------------------------------------------------------------------
# Fused Pallas kernel: build input in-kernel, then 3x (matmul+ReLU) + 1 matmul.
# Biases ride on the ones-lane; no bias adds between the MXU matmuls.
# ----------------------------------------------------------------------------
def make_fused_kernel(num_mats):
    def kernel(sow_ref, base_ref, mask_ref, w_ref, o_ref):
        sow = sow_ref[pl.program_id(0)]                # scalar from SMEM
        h = base_ref[...] + sow * mask_ref[...]        # (ROWS, 128) f32
        for l in range(num_mats - 1):
            h = jnp.maximum(
                jnp.dot(h, w_ref[l], preferred_element_type=jnp.float32), 0.0)
        last = num_mats - 1
        o_ref[...] = jnp.dot(
            h, w_ref[last], preferred_element_type=jnp.float32
        ).astype(o_ref.dtype)
    return kernel


def make_forward(packed):
    """Returns a jitted forward: sow (B,) -> tuple of 26 arrays of shape
    (B, out_size[branch]) in the module's output order."""
    num_mats = packed['num_mats']
    out_offsets = packed['out_offsets']
    out_widths = packed['out_widths']
    row_branch = [branch_index(r) for r in range(len(POSITION_EMBEDDINGS))]
    kernel = make_fused_kernel(num_mats)

    def forward(sow, base, mask, W):
        B = sow.shape[0]
        slab = pl.pallas_call(
            kernel,
            out_shape=jax.ShapeDtypeStruct((B, ROWS, LANES), jnp.float32),
            grid=(B,),
            in_specs=[
                pl.BlockSpec(memory_space=pltpu.MemorySpace.SMEM),        # sow
                pl.BlockSpec((ROWS, LANES), lambda b: (0, 0)),            # base
                pl.BlockSpec((ROWS, LANES), lambda b: (0, 0)),            # mask
                pl.BlockSpec((num_mats, LANES, LANES),
                             lambda b: (0, 0, 0)),                        # W
            ],
            out_specs=pl.BlockSpec((None, ROWS, LANES), lambda b: (b, 0, 0)),
            compiler_params=pltpu.CompilerParams(
                dimension_semantics=("parallel",)),     # v7x: split batch rows
        )(sow, base, mask, W)

        # Unpack + reorder under the same jit (no eager per-slice dispatches).
        outs = []
        for r in range(len(POSITION_EMBEDDINGS)):
            bi = row_branch[r]
            o0 = out_offsets[bi]
            w = out_widths[bi]
            outs.append(slab[:, r, o0:o0 + w])          # (B, out_size)
        return tuple(outs[i] for i in OUTPUT_ORDER)

    return jax.jit(forward)


# ----------------------------------------------------------------------------
# Pure numpy reference (unpacked, per-branch) for correctness
# ----------------------------------------------------------------------------
def hnet_forward_ref(SoW, branches):
    outputs = []
    for r, pe in enumerate(POSITION_EMBEDDINGS):
        b = branch_index(r)
        br = branches[b]
        h = np.asarray([[float(ch) for ch in pe] + [float(SoW)]], np.float32)
        for l in range(br['num_layers']):
            w, bias = br['layers'][l]
            h = np.maximum(h @ w + bias, 0.0)
        w, bias = br['layers'][br['num_layers']]
        h = h @ w + bias
        outputs.append(h)
    return [outputs[i] for i in OUTPUT_ORDER]


if __name__ == "__main__":
    SoW_len = 1                               # one scalar SoW per embedding
    output_sizes = [16, 8, 2, 8, 8, 16, 4]    # small synthetic output sizes

    key = jax.random.PRNGKey(0)
    branches = init_branch_params(key, SoW_len, output_sizes)
    packed = pack_params(branches)
    base, mask = build_base_and_mask(packed)
    W = packed['W']

    forward = make_forward(packed)

    # Batched SoW values (incl. a negative one to exercise the ReLU/identity
    # ordering invariant); one pallas_call handles all of them.
    sow_values = jnp.asarray([0.5, -1.25, 2.0, 0.0], jnp.float32)

    outs = forward(sow_values, base, mask, W)
    outs = jax.block_until_ready(outs)

    # Verify every batch element against the per-branch numpy reference.
    sow_np = np.asarray(sow_values)
    for k in range(sow_np.shape[0]):
        refs = hnet_forward_ref(float(sow_np[k]), branches)
        for o, r in zip(outs, refs):
            o_row = np.asarray(o)[k:k + 1]
            assert o_row.shape == r.shape, (o_row.shape, r.shape)
            np.testing.assert_allclose(o_row, r, rtol=1e-4, atol=1e-4)

    print("KERNEL_OK")
</pallas_src>

<mosaic_0001>
module attributes {stable_mosaic.version = 11 : i64} {
  func.func @kernel(%arg0: i32, %arg1: memref<4xf32, #tpu.memory_space<smem>>, %arg2: memref<32x128xf32, #tpu.memory_space<vmem>>, %arg3: memref<32x128xf32, #tpu.memory_space<vmem>>, %arg4: memref<4x128x128xf32, #tpu.memory_space<vmem>>, %arg5: memref<1x32x128xf32, #tpu.memory_space<vmem>>) attributes {dimension_semantics = [#tpu.dimension_semantics<parallel>], iteration_bounds = array<i64: 4>, scalar_prefetch = 0 : i64, scratch_operands = 0 : i64, tpu.core_type = #tpu.core_type<tc>, window_params = [{transform_indices = @transform_0, window_bounds = array<i64: 4>}, {pipeline_mode = #tpu.pipeline_mode<synchronous>, transform_indices = @transform_1, window_bounds = array<i64: 32, 128>}, {pipeline_mode = #tpu.pipeline_mode<synchronous>, transform_indices = @transform_2, window_bounds = array<i64: 32, 128>}, {pipeline_mode = #tpu.pipeline_mode<synchronous>, transform_indices = @transform_3, window_bounds = array<i64: 4, 128, 128>}, {transform_indices = @transform_4, window_bounds = array<i64: 1, 32, 128>}]} {
    %0 = arith.index_cast %arg0 : i32 to index
    %1 = memref.load %arg1[%0] : memref<4xf32, #tpu.memory_space<smem>>
    %c0 = arith.constant 0 : index
    %c0_0 = arith.constant 0 : index
    %2 = vector.load %arg2[%c0, %c0_0] : memref<32x128xf32, #tpu.memory_space<vmem>>, vector<32x128xf32>
    %c0_1 = arith.constant 0 : index
    %c0_2 = arith.constant 0 : index
    %3 = vector.load %arg3[%c0_1, %c0_2] : memref<32x128xf32, #tpu.memory_space<vmem>>, vector<32x128xf32>
    %4 = vector.broadcast %1 : f32 to vector<32x128xf32>
    %5 = arith.mulf %4, %3 : vector<32x128xf32>
    %6 = arith.addf %2, %5 : vector<32x128xf32>
    %c0_3 = arith.constant 0 : index
    %c0_4 = arith.constant 0 : index
    %c0_5 = arith.constant 0 : index
    %7 = vector.load %arg4[%c0_3, %c0_4, %c0_5] : memref<4x128x128xf32, #tpu.memory_space<vmem>>, vector<1x128x128xf32>
    %8 = vector.shape_cast %7 : vector<1x128x128xf32> to vector<128x128xf32>
    %cst = arith.constant dense<0.000000e+00> : vector<32x128xf32>
    %9 = tpu.matmul %6, %8, %cst {dimension_numbers = #tpu.dot_dimension_numbers<[1], [0], [0], [1], [0, 0, 1, 1], [], []>} : vector<32x128xf32>, vector<128x128xf32>, vector<32x128xf32> -> vector<32x128xf32>
    %cst_6 = arith.constant 0.000000e+00 : f32
    %10 = vector.broadcast %cst_6 : f32 to vector<32x128xf32>
    %11 = arith.maximumf %9, %10 : vector<32x128xf32>
    %c1 = arith.constant 1 : index
    %c0_7 = arith.constant 0 : index
    %c0_8 = arith.constant 0 : index
    %12 = vector.load %arg4[%c1, %c0_7, %c0_8] : memref<4x128x128xf32, #tpu.memory_space<vmem>>, vector<1x128x128xf32>
    %13 = vector.shape_cast %12 : vector<1x128x128xf32> to vector<128x128xf32>
    %cst_9 = arith.constant dense<0.000000e+00> : vector<32x128xf32>
    %14 = tpu.matmul %11, %13, %cst_9 {dimension_numbers = #tpu.dot_dimension_numbers<[1], [0], [0], [1], [0, 0, 1, 1], [], []>} : vector<32x128xf32>, vector<128x128xf32>, vector<32x128xf32> -> vector<32x128xf32>
    %cst_10 = arith.constant 0.000000e+00 : f32
    %15 = vector.broadcast %cst_10 : f32 to vector<32x128xf32>
    %16 = arith.maximumf %14, %15 : vector<32x128xf32>
    %c2 = arith.constant 2 : index
    %c0_11 = arith.constant 0 : index
    %c0_12 = arith.constant 0 : index
    %17 = vector.load %arg4[%c2, %c0_11, %c0_12] : memref<4x128x128xf32, #tpu.memory_space<vmem>>, vector<1x128x128xf32>
    %18 = vector.shape_cast %17 : vector<1x128x128xf32> to vector<128x128xf32>
    %cst_13 = arith.constant dense<0.000000e+00> : vector<32x128xf32>
    %19 = tpu.matmul %16, %18, %cst_13 {dimension_numbers = #tpu.dot_dimension_numbers<[1], [0], [0], [1], [0, 0, 1, 1], [], []>} : vector<32x128xf32>, vector<128x128xf32>, vector<32x128xf32> -> vector<32x128xf32>
    %cst_14 = arith.constant 0.000000e+00 : f32
    %20 = vector.broadcast %cst_14 : f32 to vector<32x128xf32>
    %21 = arith.maximumf %19, %20 : vector<32x128xf32>
    %c3 = arith.constant 3 : index
    %c0_15 = arith.constant 0 : index
    %c0_16 = arith.constant 0 : index
    %22 = vector.load %arg4[%c3, %c0_15, %c0_16] : memref<4x128x128xf32, #tpu.memory_space<vmem>>, vector<1x128x128xf32>
    %23 = vector.shape_cast %22 : vector<1x128x128xf32> to vector<128x128xf32>
    %cst_17 = arith.constant dense<0.000000e+00> : vector<32x128xf32>
    %24 = tpu.matmul %21, %23, %cst_17 {dimension_numbers = #tpu.dot_dimension_numbers<[1], [0], [0], [1], [0, 0, 1, 1], [], []>} : vector<32x128xf32>, vector<128x128xf32>, vector<32x128xf32> -> vector<32x128xf32>
    %c0_18 = arith.constant 0 : index
    %c0_19 = arith.constant 0 : index
    %c0_20 = arith.constant 0 : index
    %25 = vector.load %arg5[%c0_18, %c0_19, %c0_20] : memref<1x32x128xf32, #tpu.memory_space<vmem>>, vector<1x32x128xf32>
    %26 = vector.shape_cast %25 : vector<1x32x128xf32> to vector<32x128xf32>
    %27 = vector.shape_cast %24 : vector<32x128xf32> to vector<1x32x128xf32>
    tpu.vector_store %arg5[%c0_18, %c0_19, %c0_20], %27 {strides = array<i32>} : memref<1x32x128xf32, #tpu.memory_space<vmem>>, vector<1x32x128xf32>,
    return
  }
  func.func @transform_0(%arg0: i32) -> i32 {
    %c0_i32 = arith.constant 0 : i32
    %c0_i32_0 = arith.constant 0 : i32
    return %c0_i32 : i32
  }
  func.func @transform_1(%arg0: i32) -> (i32, i32) {
    %c0_i32 = arith.constant 0 : i32
    %c0_i32_0 = arith.constant 0 : i32
    %c0_i32_1 = arith.constant 0 : i32
    return %c0_i32, %c0_i32_0 : i32, i32
  }
  func.func @transform_2(%arg0: i32) -> (i32, i32) {
    %c0_i32 = arith.constant 0 : i32
    %c0_i32_0 = arith.constant 0 : i32
    %c0_i32_1 = arith.constant 0 : i32
    return %c0_i32, %c0_i32_0 : i32, i32
  }
  func.func @transform_3(%arg0: i32) -> (i32, i32, i32) {
    %c0_i32 = arith.constant 0 : i32
    %c0_i32_0 = arith.constant 0 : i32
    %c0_i32_1 = arith.constant 0 : i32
    %c0_i32_2 = arith.constant 0 : i32
    return %c0_i32, %c0_i32_0, %c0_i32_1 : i32, i32, i32
  }
  func.func @transform_4(%arg0: i32) -> (i32, i32, i32) {
    %c0_i32 = arith.constant 0 : i32
    %c0_i32_0 = arith.constant 0 : i32
    %c0_i32_1 = arith.constant 0 : i32
    return %arg0, %c0_i32, %c0_i32_0 : i32, i32, i32
  }
}

</mosaic_0001>

<bundles_post_ra>
// kernel: forward.1
= control target key start
LH: loop header
LB: loop body
LE: loop exit
PB: predicated region body
PF: predicated region fallthrough
CT: control target
= control target key end

     0   :  { %9 = vsyncpa [#allocation4], 0  ;;  %s1495_s0 = inlined_call_operand.hbm [shape: f32[4], index: 0, kind: input, shape index: {}]   ;;  %s1496_s1 = inlined_call_operand.hbm [shape: f32[32,128], index: 1, kind: input, shape index: {}]   ;;  %s1497_s2 = inlined_call_operand.hbm [shape: f32[32,128], index: 2, kind: input, shape index: {}]   ;;  %s1498_s3 = inlined_call_operand.hbm [shape: f32[4,128,128], index: 3, kind: input, shape index: {}]   ;;  %s1499_s4 = inlined_call_operand.vmem [shape: f32[4,32,128], index: 4, kind: output, shape index: {}]  }
   0x1   :  { %10 = vsyncpa [#allocation3], 0 }
   0x2   :  { %11 = vsyncpa [#allocation7], 0  ;;  %s1337_s15 = smov 0  }
   0x3 LB: > { %s1343_s16 = sadd.s32 4294967295, %s1304_s15   ;;  %p763_p0 = scmp.ge.s32.totalorder %s1304_s15, 1  ;;  %s1304_s15 = sphi %s1337_s15, %s17_s15  }
   0x4   : > { %p132_p1 = scmp.lt.s32.totalorder %s1304_s15, 5  ;;  %p1167_p2 = scmp.eq.s32.totalorder %s1343_s16, 0 }
   0x5   : > { %s1306_s18 = smov [#allocation6]   ;;  %s1307_s20 = smov [#allocation5]  }
   0x6   : > { %p1348_p3 = pnand %p763_p0, %p132_p1  ;;  %s166_s19 = sshll.u32 %s1306_s18, 4  ;;  %s1352_s19 = int_to_ptr.vmem [resolvable:$true] %s166_s19 }
   0x7   : > { %s153_s21 = sshll.u32 %s1307_s20, 4  ;;  %s1308_s23 = smov [#allocation8]   ;;  %s1362_s21 = int_to_ptr.vmem [resolvable:$true] %s153_s21 }
   0x8   : > { %p1154_p4 = pneg %p1348_p3  ;;  %s179_s24 = sshll.u32 %s1308_s23, 4  ;;  %s1364_s24 = int_to_ptr.vmem [resolvable:$true] %s179_s24 }
   0x9   : > { %s1189_s27 = scalar_lea.hbm %s1497_s2, 512 }
   0xa   : > { %p1358_p5 = pnand %p1167_p2, %p1154_p4  ;;  %p1190_p6 = scmp.ne.s32.totalorder %s1497_s2, %s1189_s27 }
   0xb   : > { %p1196_p10 = scmp.lt.u32.totalorder %s1189_s27, %s1497_s2 }
   0xc   : > { %p1374_p7 = pneg %p1358_p5 }
   0xe   : > { %p1192_p8 = pnand %p1374_p7, %p1190_p6 }
  0x10   : > { %p1193_p9 = pneg %p1192_p8 }
  0x12   : > { %p1198_p11 = pnand %p1196_p10, %p1193_p9 }
  0x14   : > { %1201 = shalt.err (!%p1198_p11)
}
  0x15   : > { %s1202_s7 = scalar_lea.vmem %s1352_s19, 512  ;;  %p1210_p1 = scmp.lt.s32.totalorder %s1352_s19, %s1352_s19 }
  0x16   : > { %p1203_p12 = scmp.ne.s32.totalorder %s1352_s19, %s1202_s7  ;;  %p1211_p4 = scmp.lt.s32.totalorder %s1202_s7, %s1202_s7 }
  0x18   : > { %p1205_p13 = pnand %p1203_p12, %p1374_p7  ;;  %p1212_p6 = por %p1211_p4, %p1210_p1 }
  0x1a   : > { %p1206_p0 = pneg %p1205_p13 }
  0x1c   : > { %p1213_p8 = pnand %p1212_p6, %p1206_p0 }
  0x1e   : > { %1216 = shalt.err (!%p1213_p8)
}
  0x1f   : > { %s1309_s8 = smov 128   ;;  %s1310_s9 = smov 8  }
  0x20   : > { %1163 = dma.hbm_to_vmem [thread:$0]  (!%p1358_p5), %s1497_s2, 512, %s1352_s19, [#allocation7], %s1309_s8, %s1309_s8, %s1310_s9  }
  0x21   : > { %s1217_s14 = scalar_lea.hbm %s1495_s0, 16 }
  0x22   : > { %p1218_p9 = scmp.ne.s32.totalorder %s1495_s0, %s1217_s14  ;;  %p1224_p12 = scmp.lt.u32.totalorder %s1217_s14, %s1495_s0 }
  0x24   : > { %p1220_p10 = pnand %p1218_p9, %p1374_p7 }
  0x26   : > { %p1221_p11 = pneg %p1220_p10 }
  0x28   : > { %p1226_p13 = pnand %p1224_p12, %p1221_p11 }
  0x2a   : > { %1229 = shalt.err (!%p1226_p13)
}
  0x2b   : > { %s1311_s26 = smov [#allocation2]   ;;  %s1230_s5 = scalar_lea.hbm %s1496_s1, 512 }
  0x2c   : > { %1157 = dma.hbm_to_smem (!%p1358_p5), %s1495_s0, 16, %s1311_s26, [#allocation4]  }
  0x2d   : > { %p1231_p0 = scmp.ne.s32.totalorder %s1496_s1, %s1230_s5  ;;  %p1237_p6 = scmp.lt.u32.totalorder %s1230_s5, %s1496_s1 }
  0x2f   : > { %p1233_p1 = pnand %p1231_p0, %p1374_p7 }
  0x31   : > { %p1234_p4 = pneg %p1233_p1 }
  0x33   : > { %p1239_p8 = pnand %p1237_p6, %p1234_p4 }
  0x35   : > { %1242 = shalt.err (!%p1239_p8)
}
  0x36   : > { %s1243_s12 = scalar_lea.vmem %s1362_s21, 512  ;;  %p1251_p12 = scmp.lt.s32.totalorder %s1362_s21, %s1362_s21 }
  0x37   : > { %p1244_p9 = scmp.ne.s32.totalorder %s1362_s21, %s1243_s12  ;;  %p1252_p13 = scmp.lt.s32.totalorder %s1243_s12, %s1243_s12 }
  0x39   : > { %p1246_p10 = pnand %p1244_p9, %p1374_p7  ;;  %p1253_p0 = por %p1252_p13, %p1251_p12 }
  0x3b   : > { %p1247_p11 = pneg %p1246_p10 }
  0x3d   : > { %p1254_p1 = pnand %p1253_p0, %p1247_p11 }
  0x3f   : > { %1257 = shalt.err (!%p1254_p1)
}
  0x40   : > { %1160 = dma.hbm_to_vmem [thread:$0]  (!%p1358_p5), %s1496_s1, 512, %s1362_s21, [#allocation3], %s1309_s8, %s1309_s8, %s1310_s9  }
  0x41   : > { %s1258_s23 = scalar_lea.hbm %s1498_s3, 8192 }
  0x42   : > { %p1259_p4 = scmp.ne.s32.totalorder %s1498_s3, %s1258_s23  ;;  %p1265_p9 = scmp.lt.u32.totalorder %s1258_s23, %s1498_s3 }
  0x44   : > { %p1261_p6 = pnand %p1259_p4, %p1374_p7 }
  0x46   : > { %p1262_p8 = pneg %p1261_p6 }
  0x48   : > { %p1267_p10 = pnand %p1265_p9, %p1262_p8 }
  0x4a   : > { %1270 = shalt.err (!%p1267_p10)
}
  0x4b   : > { %s1271_s21 = scalar_lea.vmem %s1364_s24, 8192  ;;  %p1279_p0 = scmp.lt.s32.totalorder %s1364_s24, %s1364_s24 }
  0x4c   : > { %p1272_p11 = scmp.ne.s32.totalorder %s1364_s24, %s1271_s21  ;;  %p1280_p1 = scmp.lt.s32.totalorder %s1271_s21, %s1271_s21 }
  0x4e   : > { %p1274_p12 = pnand %p1272_p11, %p1374_p7  ;;  %p1281_p4 = por %p1280_p1, %p1279_p0 }
  0x50   : > { %p1275_p13 = pneg %p1274_p12 }
  0x52   : > { %p1282_p6 = pnand %p1281_p4, %p1275_p13 }
  0x54   : > { %1285 = shalt.err (!%p1282_p6)
}
  0x55   : > { %1166 = dma.hbm_to_vmem [thread:$0]  (!%p1358_p5), %s1498_s3, 8192, %s1364_s24, [#allocation7], %s1309_s8, %s1309_s8, %s1310_s9  }
  0x56   : > { %195 = sbr.rel (%p1348_p3) target bundleno = 1001 (0x3e9), region = 36 }
  0x5d   : > { %1291 = dma.done.wait (%p1167_p2), [#allocation4], 16  }
  0x5e   : > { %1293 = vsyncadd (%p1167_p2), [#allocation4], 4294967280 }
  0x5f   : > { %1295 = dma.done.wait (%p1167_p2), [#allocation3], 512  }
  0x60   : > { %1297 = vsyncadd (%p1167_p2), [#allocation3], 4294966784 }
  0x61   : > { %1299 = dma.done.wait (%p1167_p2), [#allocation7], 8704  }
  0x62   : > { %1301 = vsyncadd (%p1167_p2), [#allocation7], 4294958592 }
  0x63   : > { %213 = sfence }
  0x64   : > { %v252_v0 = vld [vmem:[#allocation8] sm:$0xff]  ;;  %v253_v1 = vld [vmem:[#allocation8 + $0x8] sm:$0xff]  ;;  %v254_v2 = vld [vmem:[#allocation8 + $0x10] sm:$0xff]  ;;  %s234_s17 = sld [smem:[#allocation2 + %s1343_s16]]  ;;  %p229_p2 = scmp.lt.s32.totalorder %s1343_s16, 3 }
  0x65   : > { %v1010_v3 = vpack.c.bf16 %v253_v1, %v252_v0  ;;  %v255_v4 = vld [vmem:[#allocation8 + $0x18] sm:$0xff]  ;;  %v256_v6 = vld [vmem:[#allocation8 + $0x20] sm:$0xff]  ;;  %v257_v7 = vld [vmem:[#allocation8 + $0x28] sm:$0xff] }
  0x66   : > { %v1014_v5 = vpack.c.bf16 %v255_v4, %v254_v2  ;;  %v1018_v8 = vpack.c.bf16 %v257_v7, %v256_v6  ;;  %v239_v9 = vld [vmem:[#allocation6] sm:$0xff]  ;;  %v258_v10 = vld [vmem:[#allocation8 + $0x30] sm:$0xff]  ;;  %v259_v11 = vld [vmem:[#allocation8 + $0x38] sm:$0xff]  ;;  %s1504_s16 = smov (!%p229_p2, %s1343_s16), 3 }
  0x67   : > { %1011 = vmatprep.subr.bf16.mxu0 %v1010_v3  ;;  %v235_v12 = vld [vmem:[#allocation5] sm:$0xff]  ;;  %v359_v16 = vld [vmem:[#allocation8 + $0x88] sm:$0xff]  ;;  %v360_v17 = vld [vmem:[#allocation8 + $0x90] sm:$0xff]  ;;  %v1022_v18 = vpack.c.bf16 %v259_v11, %v258_v10  ;;  %s777_s22 = sshll.u32 %s1504_s16, 5 }
  0x68   : > { %1013 = vmatpush3.bf16.msra.mxu0 %v1010_v3  ;;  %v358_v15 = vld [vmem:[#allocation8 + $0x80] sm:$0xff]  ;;  %v361_v22 = vld [vmem:[#allocation8 + $0x98] sm:$0xff]  ;;  %v261_v23 = vld [vmem:[#allocation8 + $0x48] sm:$0xff]  ;;  %s233_s8 = scalar_lea.vmem %s1499_s4, %s777_s22 }
  0x69   : > { %1015 = vmatprep.subr.bf16.mxu0 %v1014_v5  ;;  %v260_v19 = vld [vmem:[#allocation8 + $0x40] sm:$0xff]  ;;  %v1042_v21 = vpack.c.bf16 %v359_v16, %v358_v15  ;;  %v1046_v24 = vpack.c.bf16 %v361_v22, %v360_v17  ;;  %v363_v26 = vld [vmem:[#allocation8 + $0xa8] sm:$0xff]  ;;  %v262_v28 = vld [vmem:[#allocation8 + $0x50] sm:$0xff] }
  0x6a   : > { %v1481_v13 = vstv %s234_s17  ;;  %v362_v25 = vld [vmem:[#allocation8 + $0xa0] sm:$0xff]  ;;  %v1026_v27 = vpack.c.bf16 %v261_v23, %v260_v19  ;;  %v263_v30 = vld [vmem:[#allocation8 + $0x58] sm:$0xff]  ;;  %v364_v31 = vld [vmem:[#allocation8 + $0xb0] sm:$0xff] }
  0x6b   : > { %v244_v14 = vmul.f32 %v1481_v13, %v239_v9  ;;  %1043 = vmatprep.subr.bf16.mxu1 %v1042_v21  ;;  %v1050_v29 = vpack.c.bf16 %v363_v26, %v362_v25  ;;  %v365_v32 = vld [vmem:[#allocation8 + $0xb8] sm:$0xff]  ;;  %v1030_v33 = vpack.c.bf16 %v263_v30, %v262_v28  ;;  %v264_v34 = vld [vmem:[#allocation8 + $0x60] sm:$0xff]  ;;  %v265_v36 = vld [vmem:[#allocation8 + $0x68] sm:$0xff] }
  0x6c   : > { %1017 = vmatpush3.bf16.msra.mxu0 %v1014_v5  ;;  %1045 = vmatpush3.bf16.msra.mxu1 %v1042_v21  ;;  %v1054_v35 = vpack.c.bf16 %v365_v32, %v364_v31  ;;  %v366_v37 = vld [vmem:[#allocation8 + $0xc0] sm:$0xff]  ;;  %v367_v38 = vld [vmem:[#allocation8 + $0xc8] sm:$0xff]  ;;  %v1034_v39 = vpack.c.bf16 %v265_v36, %v264_v34  ;;  %v266_v40 = vld [vmem:[#allocation8 + $0x70] sm:$0xff] }
  0x6d   : > { %1019 = vmatprep.subr.bf16.mxu0 %v1018_v8  ;;  %v248_v20 = vadd.f32 %v244_v14, %v235_v12  ;;  %1047 = vmatprep.subr.bf16.mxu1 %v1046_v24  ;;  %v1058_v41 = vpack.c.bf16 %v367_v38, %v366_v37  ;;  %v267_v42 = vld [vmem:[#allocation8 + $0x78] sm:$0xff]  ;;  %v368_v43 = vld [vmem:[#allocation8 + $0xd0] sm:$0xff]  ;;  %v240_v45 = vld [vmem:[#allocation6 + $0x8] sm:$0xff] }
  0x6e   : > { %v369_v44 = vld [vmem:[#allocation8 + $0xd8] sm:$0xff]  ;;  %v1038_v46 = vpack.c.bf16 %v267_v42, %v266_v40  ;;  %v241_v47 = vld [vmem:[#allocation6 + $0x10] sm:$0xff]  ;;  %v370_v49 = vld [vmem:[#allocation8 + $0xe0] sm:$0xff]  ;;  %v245_v51 = vmul.f32 %v1481_v13, %v240_v45 }
  0x6f   : > { %890 = vmatprep.mubr.f32.mxu0 %v248_v20  ;;  %v1062_v48 = vpack.c.bf16 %v369_v44, %v368_v43  ;;  %v371_v50 = vld [vmem:[#allocation8 + $0xe8] sm:$0xff]  ;;  %v246_v53 = vmul.f32 %v1481_v13, %v241_v47  ;;  %v242_v54 = vld [vmem:[#allocation6 + $0x18] sm:$0xff]  ;;  %v237_v55 = vld [vmem:[#allocation5 + $0x10] sm:$0xff] }
  0x70   : > { %1021 = vmatpush3.bf16.msra.mxu0 %v1018_v8  ;;  %1049 = vmatpush3.bf16.msra.mxu1 %v1046_v24  ;;  %v236_v52 = vld [vmem:[#allocation5 + $0x8] sm:$0xff]  ;;  %v1066_v56 = vpack.c.bf16 %v371_v50, %v370_v49  ;;  %v247_v58 = vmul.f32 %v1481_v13, %v242_v54  ;;  %v238_v60 = vld [vmem:[#allocation5 + $0x18] sm:$0xff]  ;;  %v372_v62 = vld [vmem:[#allocation8 + $0xf0] sm:$0xff] }
  0x71   : > { %1023 = vmatprep.subr.bf16.mxu0 %v1022_v18  ;;  %1051 = vmatprep.subr.bf16.mxu1 %v1050_v29  ;;  %v249_v57 = vadd.f32 %v245_v51, %v236_v52  ;;  %v250_v59 = vadd.f32 %v246_v53, %v237_v55  ;;  %v373_v63 = vld [vmem:[#allocation8 + $0xf8] sm:$0xff]  ;;  %v464_v1 = vld [vmem:[#allocation8 + $0x100] sm:$0xff]  ;;  %v465_v2 = vld [vmem:[#allocation8 + $0x108] sm:$0xff] }
  0x72   : > { %v251_v61 = vadd.f32 %v247_v58, %v238_v60  ;;  %v1070_v0 = vpack.c.bf16 %v373_v63, %v372_v62  ;;  %v466_v3 = vld [vmem:[#allocation8 + $0x110] sm:$0xff]  ;;  %v1074_v4 = vpack.c.bf16 %v465_v2, %v464_v1  ;;  %v467_v5 = vld [vmem:[#allocation8 + $0x118] sm:$0xff]  ;;  %v468_v7 = vld [vmem:[#allocation8 + $0x120] sm:$0xff] }
  0x73   : > { %v1078_v6 = vpack.c.bf16 %v467_v5, %v466_v3  ;;  %v469_v8 = vld [vmem:[#allocation8 + $0x128] sm:$0xff]  ;;  %v470_v10 = vld [vmem:[#allocation8 + $0x130] sm:$0xff]  ;;  %v471_v11 = vld [vmem:[#allocation8 + $0x138] sm:$0xff] }
  0x74   : > { %1025 = vmatpush3.bf16.msra.mxu0 %v1022_v18  ;;  %1053 = vmatpush3.bf16.msra.mxu1 %v1050_v29  ;;  %v1082_v9 = vpack.c.bf16 %v469_v8, %v468_v7  ;;  %v1086_v12 = vpack.c.bf16 %v471_v11, %v470_v10  ;;  %v472_v13 = vld [vmem:[#allocation8 + $0x140] sm:$0xff]  ;;  %v473_v14 = vld [vmem:[#allocation8 + $0x148] sm:$0xff]  ;;  %v474_v16 = vld [vmem:[#allocation8 + $0x150] sm:$0xff] }
  0x75   : > { %1027 = vmatprep.subr.bf16.mxu0 %v1026_v27  ;;  %1055 = vmatprep.subr.bf16.mxu1 %v1054_v35  ;;  %v1090_v15 = vpack.c.bf16 %v473_v14, %v472_v13  ;;  %v475_v17 = vld [vmem:[#allocation8 + $0x158] sm:$0xff]  ;;  %v476_v19 = vld [vmem:[#allocation8 + $0x160] sm:$0xff]  ;;  %v477_v20 = vld [vmem:[#allocation8 + $0x168] sm:$0xff] }
  0x76   : > { %v1094_v18 = vpack.c.bf16 %v475_v17, %v474_v16  ;;  %v1098_v21 = vpack.c.bf16 %v477_v20, %v476_v19  ;;  %v478_v30 = vld [vmem:[#allocation8 + $0x170] sm:$0xff]  ;;  %v479_v31 = vld [vmem:[#allocation8 + $0x178] sm:$0xff]  ;;  %v571_v34 = vld [vmem:[#allocation8 + $0x188] sm:$0xff] }
  0x77   : > { %v1102_v32 = vpack.c.bf16 %v479_v31, %v478_v30  ;;  %v573_v37 = vld [vmem:[#allocation8 + $0x198] sm:$0xff]  ;;  %v575_v40 = vld [vmem:[#allocation8 + $0x1a8] sm:$0xff]  ;;  %v576_v42 = vld [vmem:[#allocation8 + $0x1b0] sm:$0xff] }
  0x78   : > { %1029 = vmatpush3.bf16.msra.mxu0 %v1026_v27  ;;  %1057 = vmatpush3.bf16.msra.mxu1 %v1054_v35  ;;  %v572_v35 = vld [vmem:[#allocation8 + $0x190] sm:$0xff]  ;;  %v577_v43 = vld [vmem:[#allocation8 + $0x1b8] sm:$0xff]  ;;  %v578_v45 = vld [vmem:[#allocation8 + $0x1c0] sm:$0xff] }
  0x79   : > { %1031 = vmatprep.subr.bf16.mxu0 %v1030_v33  ;;  %1059 = vmatprep.subr.bf16.mxu1 %v1058_v41  ;;  %v1110_v38 = vpack.c.bf16 %v573_v37, %v572_v35  ;;  %v1118_v44 = vpack.c.bf16 %v577_v43, %v576_v42  ;;  %v581_v49 = vld [vmem:[#allocation8 + $0x1d8] sm:$0xff]  ;;  %v582_v51 = vld [vmem:[#allocation8 + $0x1e0] sm:$0xff]  ;;  %v583_v52 = vld [vmem:[#allocation8 + $0x1e8] sm:$0xff] }
  0x7a   : > { %v1130_v53 = vpack.c.bf16 %v583_v52, %v582_v51  ;;  %v584_v62 = vld [vmem:[#allocation8 + $0x1f0] sm:$0xff]  ;;  %v585_v63 = vld [vmem:[#allocation8 + $0x1f8] sm:$0xff] }
  0x7c   : > { %1033 = vmatpush3.bf16.msra.mxu0 %v1030_v33  ;;  %1061 = vmatpush3.bf16.msra.mxu1 %v1058_v41  ;;  %v570_v33 = vld [vmem:[#allocation8 + $0x180] sm:$0xff] }
  0x7d   : > { %1035 = vmatprep.subr.bf16.mxu0 %v1034_v39  ;;  %1063 = vmatprep.subr.bf16.mxu1 %v1062_v48  ;;  %v1106_v36 = vpack.c.bf16 %v571_v34, %v570_v33 }
  0x80   : > { %1037 = vmatpush3.bf16.msra.mxu0 %v1034_v39  ;;  %1065 = vmatpush3.bf16.msra.mxu1 %v1062_v48  ;;  %v574_v39 = vld [vmem:[#allocation8 + $0x1a0] sm:$0xff]  ;;  %v580_v48 = vld [vmem:[#allocation8 + $0x1d0] sm:$0xff] }
  0x81   : > { %1039 = vmatprep.subr.bf16.mxu0 %v1038_v46  ;;  %1067 = vmatprep.subr.bf16.mxu1 %v1066_v56  ;;  %v1114_v41 = vpack.c.bf16 %v575_v40, %v574_v39  ;;  %v1126_v50 = vpack.c.bf16 %v581_v49, %v580_v48 }
  0x84   : > { %1041 = vmatpush3.bf16.msra.mxu0 %v1038_v46  ;;  %1069 = vmatpush3.bf16.msra.mxu1 %v1066_v56  ;;  %v579_v46 = vld [vmem:[#allocation8 + $0x1c8] sm:$0xff] }
  0x85   : > { %1071 = vmatprep.subr.bf16.mxu1 %v1070_v0  ;;  %1075 = vmatprep.subr.bf16.mxu0 %v1074_v4  ;;  %v1122_v47 = vpack.c.bf16 %v579_v46, %v578_v45 }
  0x87   : > { %891 = vmatmul.mubr.f32.vlgmr.msra.gmra.mrb[0].mxu0 %v249_v57 }
  0x88   : > { %893 = vmatprep.mubr.f32.mxu0 %v250_v59  ;;  %1073 = vmatpush3.bf16.msra.mxu1 %v1070_v0  ;;  %v1134_v0 = vpack.c.bf16 %v585_v63, %v584_v62 }
  0x89   : > { %1077 = vmatpush3.bf16.msra.mxu0 %v1074_v4  ;;  %1107 = vmatprep.subr.bf16.mxu1 %v1106_v36 }
  0x8a   : > { %1079 = vmatprep.subr.bf16.mxu0 %v1078_v6 }
  0x8b   : > { %894 = vmatmul.mubr.f32.gmra.mrb[2].mxu0 %v251_v61 }
  0x8d   : > { %1081 = vmatpush3.bf16.msra.mxu0 %v1078_v6 }
  0x8e   : > { %1083 = vmatprep.subr.bf16.mxu0 %v1082_v9 }
  0x91   : > { %1085 = vmatpush3.bf16.msra.mxu0 %v1082_v9 }
  0x92   : > { %1087 = vmatprep.subr.bf16.mxu0 %v1086_v12 }
  0x95   : > { %1089 = vmatpush3.bf16.msra.mxu0 %v1086_v12 }
  0x96   : > { %1091 = vmatprep.subr.bf16.mxu0 %v1090_v15 }
  0x99   : > { %1093 = vmatpush3.bf16.msra.mxu0 %v1090_v15 }
  0x9a   : > { %1095 = vmatprep.subr.bf16.mxu0 %v1094_v18 }
  0x9d   : > { %1097 = vmatpush3.bf16.msra.mxu0 %v1094_v18 }
  0x9e   : > { %1099 = vmatprep.subr.bf16.mxu0 %v1098_v21 }
  0xa1   : > { %1101 = vmatpush3.bf16.msra.mxu0 %v1098_v21 }
  0xa2   : > { %1103 = vmatprep.subr.bf16.mxu0 %v1102_v32 }
  0xa5   : > { %1105 = vmatpush3.bf16.msra.mxu0 %v1102_v32 }
 0x15a   : > { %v892_v22 = vpop.f32.mrb[0].mxu0 }
 0x15b   : > { %v334_v23 = vpop.f32.mrb[1].mxu0  ;;  %v354_v25 = vmax.f32 %v892_v22, 0.0 }
 0x15c   : > { %v353_v24 = vmax.f32 %v334_v23, 0.0 }
 0x15e   : > { %v895_v26 = vpop.f32.mrb[2].mxu0  ;;  %928 = vmatprep.mubr.f32.mxu1 %v353_v24 }
 0x15f   : > { %v344_v27 = vpop.f32.mrb[3].mxu0  ;;  %929 = vmatmul.mubr.f32.vlgmr.msra.gmra.mrb[0].mxu1 %v354_v25  ;;  %v356_v29 = vmax.f32 %v895_v26, 0.0 }
 0x160   : > { %v355_v28 = vmax.f32 %v344_v27, 0.0  ;;  %1109 = vmatpush3.bf16.msra.mxu1 %v1106_v36 }
 0x161   : > { %1111 = vmatprep.subr.bf16.mxu1 %v1110_v38 }
 0x162   : > { %931 = vmatprep.mubr.f32.mxu1 %v355_v28 }
 0x163   : > { %932 = vmatmul.mubr.f32.gmra.mrb[2].mxu1 %v356_v29 }
 0x164   : > { %1113 = vmatpush3.bf16.msra.mxu1 %v1110_v38 }
 0x165   : > { %1115 = vmatprep.subr.bf16.mxu1 %v1114_v41 }
 0x168   : > { %1117 = vmatpush3.bf16.msra.mxu1 %v1114_v41 }
 0x169   : > { %1119 = vmatprep.subr.bf16.mxu1 %v1118_v44 }
 0x16c   : > { %1121 = vmatpush3.bf16.msra.mxu1 %v1118_v44 }
 0x16d   : > { %1123 = vmatprep.subr.bf16.mxu1 %v1122_v47 }
 0x170   : > { %1125 = vmatpush3.bf16.msra.mxu1 %v1122_v47 }
 0x171   : > { %1127 = vmatprep.subr.bf16.mxu1 %v1126_v50 }
 0x174   : > { %1129 = vmatpush3.bf16.msra.mxu1 %v1126_v50 }
 0x175   : > { %1131 = vmatprep.subr.bf16.mxu1 %v1130_v53 }
 0x178   : > { %1133 = vmatpush3.bf16.msra.mxu1 %v1130_v53 }
 0x179   : > { %1135 = vmatprep.subr.bf16.mxu1 %v1134_v0 }
 0x17c   : > { %1137 = vmatpush3.bf16.msra.mxu1 %v1134_v0 }
 0x232   : > { %v930_v54 = vpop.f32.mrb[0].mxu1 }
 0x233   : > { %v440_v55 = vpop.f32.mrb[1].mxu1  ;;  %v460_v57 = vmax.f32 %v930_v54, 0.0 }
 0x234   : > { %v459_v56 = vmax.f32 %v440_v55, 0.0 }
 0x236   : > { %v933_v58 = vpop.f32.mrb[2].mxu1  ;;  %966 = vmatprep.mubr.f32.mxu0 %v459_v56 }
 0x237   : > { %v450_v59 = vpop.f32.mrb[3].mxu1  ;;  %967 = vmatmul.mubr.f32.vlgmr.msra.gmra.mrb[4].mxu0 %v460_v57  ;;  %v462_v61 = vmax.f32 %v933_v58, 0.0 }
 0x238   : > { %v461_v60 = vmax.f32 %v450_v59, 0.0 }
 0x23a   : > { %969 = vmatprep.mubr.f32.mxu0 %v461_v60 }
 0x23b   : > { %970 = vmatmul.mubr.f32.gmra.mrb[6].mxu0 %v462_v61 }
 0x30a   : > { %v968_v1 = vpop.f32.mrb[4].mxu0 }
 0x30b   : > { %v546_v2 = vpop.f32.mrb[5].mxu0  ;;  %v566_v4 = vmax.f32 %v968_v1, 0.0 }
 0x30c   : > { %v565_v3 = vmax.f32 %v546_v2, 0.0 }
 0x30e   : > { %v971_v5 = vpop.f32.mrb[6].mxu0  ;;  %1004 = vmatprep.mubr.f32.mxu1 %v565_v3 }
 0x30f   : > { %v556_v6 = vpop.f32.mrb[7].mxu0  ;;  %1005 = vmatmul.mubr.f32.vlgmr.msra.gmra.mrb[4].mxu1 %v566_v4  ;;  %v568_v8 = vmax.f32 %v971_v5, 0.0 }
 0x310   : > { %v567_v7 = vmax.f32 %v556_v6, 0.0 }
 0x312   : > { %1007 = vmatprep.mubr.f32.mxu1 %v567_v7 }
 0x313   : > { %1008 = vmatmul.mubr.f32.gmra.mrb[6].mxu1 %v568_v8 }
 0x3e2   : > { %v1006_v9 = vpop.f32.mrb[4].mxu1 }
 0x3e3   : > { %672 = vst [vmem:[%s233_s8 + $0x8] sm:$0xff] %v1006_v9  ;;  %v652_v10 = vpop.f32.mrb[5].mxu1 }
 0x3e4   : > { %671 = vst [vmem:[%s233_s8] sm:$0xff] %v652_v10 }
 0x3e6   : > { %v1009_v11 = vpop.f32.mrb[6].mxu1 }
 0x3e7   : > { %674 = vst [vmem:[%s233_s8 + $0x18] sm:$0xff] %v1009_v11  ;;  %v662_v12 = vpop.f32.mrb[7].mxu1 }
 0x3e8   : > { %673 = vst [vmem:[%s233_s8 + $0x10] sm:$0xff] %v662_v12 }
 0x3e9 PF: > { %s17_s15 = sadd.s32 1, %s1304_s15  }
 0x3ea   : > { %p14_p3 = scmp.ge.s32.totalorder %s17_s15, 6  }
 0x3ec   :  { %16 = sbr.rel (!%p14_p3) target bundleno = 3 (0x3), region = 84 }
 0x3f3   :  { %696 = vsyncpa [#allocation3], 1 }
 0x3f4   :  { %698 = vsyncpa [#allocation3 + $0x1], 1 }
 0x3f5   :  { %699 = vsyncpa [#allocation7], 1 }
 0x3f6   :  { %700 = vsyncpa [#allocation4], 1 }
 0x3f7   :  { %702 = vsyncpa [#allocation4 + $0x1], 1 }

</bundles_post_ra>
